<compile_context>
chip_gen: v7x
topology: tpu7x:2x2x1
jax: 0.10.0
libtpu: 0.0.40
codegen_flags: <defaults>
</compile_context>

<pallas_src>
import functools

import jax
import jax.numpy as jnp
from jax.experimental import pallas as pl
from jax.experimental.pallas import tpu as pltpu

T_STUDENT = 0.07     # self.t
TEMP = 1e-4          # self.temp (distillation temperature)
MOMENTUM = 0.99      # self.m
LANE = 128


def _round_up(x, m):
    return (x + m - 1) // m * m


def _l2_normalize(x, eps=1e-12):
    # F.normalize(x, dim=1): x / max(||x||, eps) == x * rsqrt(max(sumsq, eps^2))
    sumsq = jnp.sum(x * x, axis=1, keepdims=True)
    return x * jax.lax.rsqrt(jnp.maximum(sumsq, eps * eps))


def distiller_kernel(pooled_ref, stem_w_ref, stem_b_ref, tea_w_ref, tea_b_ref,
                     fc1_w_ref, fc1_b_ref, fc2_w_ref, fc2_b_ref,
                     queue_ref, cls_ref, emb_ref, logits_ref):
    N = pooled_ref.shape[0]
    C = queue_ref.shape[1]
    P = logits_ref.shape[1]            # lane-dense padded width (>= 2C + 1)
    inv_t = jnp.float32(1.0 / T_STUDENT)
    inv_temp = jnp.float32(1.0 / TEMP)

    # ---- backbones folded in: student stem / frozen teacher (f32 MXU) ----
    pooled = pooled_ref[...]
    s_feat = jnp.dot(pooled, stem_w_ref[...],
                     preferred_element_type=jnp.float32) + stem_b_ref[...]
    t_raw = jnp.dot(pooled, tea_w_ref[...],
                    preferred_element_type=jnp.float32) + tea_b_ref[...]

    # ---- student fc head: Linear -> ReLU -> Linear (bf16 MXU, f32 acc) ----
    h = jnp.dot(s_feat.astype(jnp.bfloat16), fc1_w_ref[...],
                preferred_element_type=jnp.float32) + fc1_b_ref[...]
    h = jnp.maximum(h, 0.0)
    s_raw = jnp.dot(h.astype(jnp.bfloat16), fc2_w_ref[...],
                    preferred_element_type=jnp.float32) + fc2_b_ref[...]

    # ---- L2 normalization (f32, rsqrt on EUP) -----------------------------
    s_emb = _l2_normalize(s_raw)
    t_emb = _l2_normalize(t_raw)

    # Row-stack [student; teacher] (sublane-aligned boundary at row N).
    emb = jnp.concatenate([s_emb, t_emb], axis=0)        # (2N, D) f32
    emb_ref[...] = emb

    # ---- queue / classifier matmuls with M = 2N (bf16 MXU, f32 acc) ------
    emb_bf = emb.astype(jnp.bfloat16)
    img = jnp.dot(emb_bf, queue_ref[...].astype(jnp.bfloat16),
                  preferred_element_type=jnp.float32)    # (2N, C)
    txt = jnp.dot(emb_bf, cls_ref[...],
                  preferred_element_type=jnp.float32)    # (2N, C)
    # TODO(synk): bf16 rounding (~0.4%) is amplified by 1/temp=1e4 inside the
    # teacher exp(); switch the teacher rows to an f32 matmul if exact parity
    # with the PyTorch softmax / argmax is required.

    # ---- student band (rows [0, N)): plain scaled logits ------------------
    stu_img = img[:N] * inv_t
    stu_txt = txt[:N] * inv_t
    s_pos = jnp.sum(s_emb * t_emb, axis=1, keepdims=True) * inv_t     # (N, 1)

    # ---- teacher band (rows [N, 2N)): softmax(logits / temp) --------------
    # Positive logit sum(t_emb * t_emb) == 1.0 exactly after L2 normalization.
    ti = img[N:] * inv_temp
    tt = txt[N:] * inv_temp
    m_img = jnp.maximum(inv_temp, jnp.max(ti, axis=1, keepdims=True))
    e_img = jnp.exp(ti - m_img)
    e_pos = jnp.exp(inv_temp - m_img)                                  # (N, 1)
    inv_den_img = 1.0 / (e_pos + jnp.sum(e_img, axis=1, keepdims=True))
    tea_img = e_img * inv_den_img
    tea_pos = e_pos * inv_den_img
    m_txt = jnp.max(tt, axis=1, keepdims=True)
    e_txt = jnp.exp(tt - m_txt)
    tea_txt = e_txt * (1.0 / jnp.sum(e_txt, axis=1, keepdims=True))

    # ---- assemble the lane-dense padded output slab ------------------------
    # cols [0,C) = image/queue block, [C,2C) = text block, col 2C = positive,
    # cols (2C, P) = zero padding.  Full-width unmasked store.
    tail_col = jax.lax.broadcasted_iota(jnp.int32, (N, P - 2 * C), 1)
    stu_tail = jnp.where(tail_col == 0, s_pos, 0.0)
    tea_tail = jnp.where(tail_col == 0, tea_pos, 0.0)
    stu_rows = jnp.concatenate([stu_img, stu_txt, stu_tail], axis=1)
    tea_rows = jnp.concatenate([tea_img, tea_txt, tea_tail], axis=1)
    logits_ref[...] = jnp.concatenate([stu_rows, tea_rows], axis=0)


def _dequeue_and_enqueue(keys, tea_text_scores, queue, queue_ptr, m=MOMENTUM):
    """Momentum update of the class-queue buffer (stateful side effect of the
    PyTorch forward).  Pure-JAX glue: data-dependent scatter-mean over classes.
    Reuses the teacher-text scores computed in the kernel (argmax of the
    softmax equals argmax of the raw keys @ classifier logits).
    """
    # TODO(synk): concat_all_gather (multi-device gather) omitted; single-device path.
    C = queue.shape[1]
    cls_ids = jnp.argmax(tea_text_scores, axis=1)                # (N,)
    onehot = (cls_ids[:, None] == jnp.arange(C)[None, :]).astype(keys.dtype)
    counts = jnp.sum(onehot, axis=0)                             # (C,)
    sums = keys.T @ onehot                                       # (D, C)
    z_c = sums / jnp.maximum(counts, 1.0)[None, :]
    present = counts > 0
    flag = queue_ptr > 0
    updated = jnp.where(flag[None, :], m * queue + (1.0 - m) * z_c, z_c)
    new_queue = jnp.where(present[None, :], updated, queue)
    new_ptr = jnp.where(present, jnp.ones_like(queue_ptr), queue_ptr)
    return new_queue, new_ptr


@functools.partial(jax.jit, static_argnames=("inference",))
def clip_distiller_forward(image, params, inference=False):
    """Returns the same 6-tuple as ClipDistiller.forward, plus the updated
    (queue, queue_ptr) buffers (PyTorch mutates them in place)."""
    N = image.shape[0]
    D, C = params["queue"].shape
    dm = params["fc1_w"].shape[0]
    P = max(LANE, _round_up(2 * C + 1, LANE))    # lane-dense logits width

    # Glue: synthetic backbone pooling (NCHW global average pool).
    pooled = jnp.mean(image, axis=(2, 3))                          # (N, Cin)
    cin = pooled.shape[1]

    args = (pooled,
            params["stem_w"], params["stem_b"],
            params["teacher_w"], params["teacher_b"],
            params["fc1_w"], params["fc1_b"],
            params["fc2_w"], params["fc2_b"],
            params["queue"], params["classifier"])

    out_shapes = (
        jax.ShapeDtypeStruct((2 * N, D), jnp.float32),   # [s_emb; t_emb]
        jax.ShapeDtypeStruct((2 * N, P), jnp.float32),   # padded logits slab
    )

    # Advisory cost hint for XLA scheduling of this latency-bound dispatch.
    flops = (2 * N * (cin * dm + cin * D + dm * dm + dm * D)
             + 2 * (2 * N) * D * (2 * C))
    in_bytes = sum(int(a.size) * a.dtype.itemsize for a in args)
    out_bytes = (2 * N * D + 2 * N * P) * 4
    cost = pl.CostEstimate(flops=flops,
                           transcendentals=N * (2 * C + 2) + 6 * N,
                           bytes_accessed=in_bytes + out_bytes)

    vmem = functools.partial(pl.BlockSpec, memory_space=pltpu.MemorySpace.VMEM)
    # TODO(synk): at production N/C add a "parallel" row grid (tile ~128-256
    # student rows per step, teacher band stacked per tile, weights resident
    # via a constant index_map) and set pltpu.CompilerParams(vmem_limit_bytes=...)
    # sized against v7x's 64 MiB VMEM so both v7x TensorCores are used.
    emb_out, logits_out = pl.pallas_call(
        distiller_kernel,
        out_shape=out_shapes,
        in_specs=[vmem() for _ in args],
        out_specs=tuple(vmem() for _ in out_shapes),
        cost_estimate=cost,
    )(*args)

    s_emb = emb_out[:N]
    t_emb = emb_out[N:]
    # Reassemble the torch.cat([pos, img], dim=1) layout from the padded slab
    # (cheap static slices on a lane-dense kernel output).
    logit_stu_img = jnp.concatenate(
        [logits_out[:N, 2 * C:2 * C + 1], logits_out[:N, 0:C]], axis=1)
    logit_tea_img = jnp.concatenate(
        [logits_out[N:, 2 * C:2 * C + 1], logits_out[N:, 0:C]], axis=1)
    logit_stu_text = logits_out[:N, C:2 * C]
    logit_tea_text = logits_out[N:, C:2 * C]

    new_queue, new_ptr = params["queue"], params["queue_ptr"]
    if not inference:
        new_queue, new_ptr = _dequeue_and_enqueue(
            t_emb, logit_tea_text, params["queue"], params["queue_ptr"])

    return (logit_stu_img, logit_tea_img, logit_stu_text, logit_tea_text,
            s_emb, t_emb), (new_queue, new_ptr)


def init_params(key, cin=4, dim_mlp=64, dim=128, num_cls=32):
    ks = jax.random.split(key, 6)
    std = 0.05
    params = {
        # student backbone stem (folded into the kernel, f32)
        "stem_w": jax.random.normal(ks[0], (cin, dim_mlp), jnp.float32) * std,
        "stem_b": jnp.zeros((1, dim_mlp), jnp.float32),
        # student fc head: Linear(dm, dm) -> ReLU -> Linear(dm, dim)
        # MXU-only weights stored persistently in bf16 (no per-step casts).
        "fc1_w": (jax.random.normal(ks[1], (dim_mlp, dim_mlp), jnp.float32)
                  * std).astype(jnp.bfloat16),
        "fc1_b": jnp.zeros((1, dim_mlp), jnp.float32),
        "fc2_w": (jax.random.normal(ks[2], (dim_mlp, dim), jnp.float32)
                  * std).astype(jnp.bfloat16),
        "fc2_b": jnp.zeros((1, dim), jnp.float32),
        # frozen teacher encoder (folded into the kernel, f32)
        "teacher_w": jax.random.normal(ks[3], (cin, dim), jnp.float32) * std,
        "teacher_b": jnp.zeros((1, dim), jnp.float32),
        # classifier weights (dim, C): persistent bf16 (MXU-only operand).
        "classifier": jax.random.normal(ks[4], (dim, num_cls),
                                        jnp.float32).astype(jnp.bfloat16),
    }
    # queue buffer (dim, C), L2-normalized along dim=0 as in the PyTorch init.
    queue = jax.random.normal(ks[5], (dim, num_cls), jnp.float32)
    params["queue"] = queue / jnp.linalg.norm(queue, axis=0, keepdims=True)
    params["queue_ptr"] = jnp.zeros((num_cls,), jnp.int32)
    return params


if __name__ == "__main__":
    key = jax.random.PRNGKey(0)
    k_img, k_par = jax.random.split(key)

    N, CIN, H, W = 8, 4, 16, 16
    C, D = 32, 128
    image = jax.random.normal(k_img, (N, CIN, H, W), jnp.float32)  # NCHW
    params = init_params(k_par, cin=CIN, dim_mlp=64, dim=D, num_cls=C)

    outs, state = clip_distiller_forward(image, params, inference=False)
    outs = jax.block_until_ready(outs)
    state = jax.block_until_ready(state)

    (logit_stu_img, logit_tea_img, logit_stu_text, logit_tea_text,
     s_emb, t_emb) = outs
    new_queue, new_ptr = state

    assert logit_stu_img.shape == (N, 1 + C)
    assert logit_tea_img.shape == (N, 1 + C)
    assert logit_stu_text.shape == (N, C)
    assert logit_tea_text.shape == (N, C)
    assert s_emb.shape == (N, D) and t_emb.shape == (N, D)
    assert new_queue.shape == (D, C) and new_ptr.shape == (C,)

    # Sanity: outputs finite, embeddings unit-norm, teacher softmaxes sum to 1.
    for arr in outs:
        assert bool(jnp.all(jnp.isfinite(arr)))
    assert bool(jnp.allclose(jnp.sum(s_emb * s_emb, axis=1), 1.0, atol=1e-3))
    assert bool(jnp.allclose(jnp.sum(t_emb * t_emb, axis=1), 1.0, atol=1e-3))
    assert bool(jnp.allclose(jnp.sum(logit_tea_img, axis=1), 1.0, atol=1e-2))
    assert bool(jnp.allclose(jnp.sum(logit_tea_text, axis=1), 1.0, atol=1e-2))

    print("KERNEL_OK")
</pallas_src>

<mosaic_0001>
module attributes {stable_mosaic.version = 11 : i64} {
  func.func @distiller_kernel(%arg0: memref<8x4xf32, #tpu.memory_space<vmem>>, %arg1: memref<4x64xf32, #tpu.memory_space<vmem>>, %arg2: memref<1x64xf32, #tpu.memory_space<vmem>>, %arg3: memref<4x128xf32, #tpu.memory_space<vmem>>, %arg4: memref<1x128xf32, #tpu.memory_space<vmem>>, %arg5: memref<64x64xbf16, #tpu.memory_space<vmem>>, %arg6: memref<1x64xf32, #tpu.memory_space<vmem>>, %arg7: memref<64x128xbf16, #tpu.memory_space<vmem>>, %arg8: memref<1x128xf32, #tpu.memory_space<vmem>>, %arg9: memref<128x32xf32, #tpu.memory_space<vmem>>, %arg10: memref<128x32xbf16, #tpu.memory_space<vmem>>, %arg11: memref<16x128xf32, #tpu.memory_space<vmem>>, %arg12: memref<16x128xf32, #tpu.memory_space<vmem>>) attributes {dimension_semantics = [], scalar_prefetch = 0 : i64, scratch_operands = 0 : i64, tpu.core_type = #tpu.core_type<tc>} {
    %c0 = arith.constant 0 : index
    %c0_0 = arith.constant 0 : index
    %0 = vector.load %arg0[%c0, %c0_0] : memref<8x4xf32, #tpu.memory_space<vmem>>, vector<8x4xf32>
    %c0_1 = arith.constant 0 : index
    %c0_2 = arith.constant 0 : index
    %1 = vector.load %arg1[%c0_1, %c0_2] : memref<4x64xf32, #tpu.memory_space<vmem>>, vector<4x64xf32>
    %cst = arith.constant dense<0.000000e+00> : vector<8x64xf32>
    %2 = tpu.matmul %0, %1, %cst {dimension_numbers = #tpu.dot_dimension_numbers<[1], [0], [0], [1], [0, 0, 1, 1], [], []>} : vector<8x4xf32>, vector<4x64xf32>, vector<8x64xf32> -> vector<8x64xf32>
    %c0_3 = arith.constant 0 : index
    %c0_4 = arith.constant 0 : index
    %3 = vector.load %arg2[%c0_3, %c0_4] : memref<1x64xf32, #tpu.memory_space<vmem>>, vector<1x64xf32>
    %4 = vector.broadcast %3 : vector<1x64xf32> to vector<8x64xf32>
    %5 = arith.addf %2, %4 : vector<8x64xf32>
    %c0_5 = arith.constant 0 : index
    %c0_6 = arith.constant 0 : index
    %6 = vector.load %arg3[%c0_5, %c0_6] : memref<4x128xf32, #tpu.memory_space<vmem>>, vector<4x128xf32>
    %cst_7 = arith.constant dense<0.000000e+00> : vector<8x128xf32>
    %7 = tpu.matmul %0, %6, %cst_7 {dimension_numbers = #tpu.dot_dimension_numbers<[1], [0], [0], [1], [0, 0, 1, 1], [], []>} : vector<8x4xf32>, vector<4x128xf32>, vector<8x128xf32> -> vector<8x128xf32>
    %c0_8 = arith.constant 0 : index
    %c0_9 = arith.constant 0 : index
    %8 = vector.load %arg4[%c0_8, %c0_9] : memref<1x128xf32, #tpu.memory_space<vmem>>, vector<1x128xf32>
    %9 = vector.broadcast %8 : vector<1x128xf32> to vector<8x128xf32>
    %10 = arith.addf %7, %9 : vector<8x128xf32>
    %11 = arith.truncf %5 : vector<8x64xf32> to vector<8x64xbf16>
    %c0_10 = arith.constant 0 : index
    %c0_11 = arith.constant 0 : index
    %12 = vector.load %arg5[%c0_10, %c0_11] : memref<64x64xbf16, #tpu.memory_space<vmem>>, vector<64x64xbf16>
    %cst_12 = arith.constant dense<0.000000e+00> : vector<8x64xf32>
    %13 = tpu.matmul %11, %12, %cst_12 {dimension_numbers = #tpu.dot_dimension_numbers<[1], [0], [0], [1], [0, 0, 1, 1], [], []>} : vector<8x64xbf16>, vector<64x64xbf16>, vector<8x64xf32> -> vector<8x64xf32>
    %c0_13 = arith.constant 0 : index
    %c0_14 = arith.constant 0 : index
    %14 = vector.load %arg6[%c0_13, %c0_14] : memref<1x64xf32, #tpu.memory_space<vmem>>, vector<1x64xf32>
    %15 = vector.broadcast %14 : vector<1x64xf32> to vector<8x64xf32>
    %16 = arith.addf %13, %15 : vector<8x64xf32>
    %cst_15 = arith.constant 0.000000e+00 : f32
    %17 = vector.broadcast %cst_15 : f32 to vector<8x64xf32>
    %18 = arith.maximumf %16, %17 : vector<8x64xf32>
    %19 = arith.truncf %18 : vector<8x64xf32> to vector<8x64xbf16>
    %c0_16 = arith.constant 0 : index
    %c0_17 = arith.constant 0 : index
    %20 = vector.load %arg7[%c0_16, %c0_17] : memref<64x128xbf16, #tpu.memory_space<vmem>>, vector<64x128xbf16>
    %cst_18 = arith.constant dense<0.000000e+00> : vector<8x128xf32>
    %21 = tpu.matmul %19, %20, %cst_18 {dimension_numbers = #tpu.dot_dimension_numbers<[1], [0], [0], [1], [0, 0, 1, 1], [], []>} : vector<8x64xbf16>, vector<64x128xbf16>, vector<8x128xf32> -> vector<8x128xf32>
    %c0_19 = arith.constant 0 : index
    %c0_20 = arith.constant 0 : index
    %22 = vector.load %arg8[%c0_19, %c0_20] : memref<1x128xf32, #tpu.memory_space<vmem>>, vector<1x128xf32>
    %23 = vector.broadcast %22 : vector<1x128xf32> to vector<8x128xf32>
    %24 = arith.addf %21, %23 : vector<8x128xf32>
    %25 = arith.mulf %24, %24 : vector<8x128xf32>
    %cst_21 = arith.constant dense<0.000000e+00> : vector<8xf32>
    %26 = vector.multi_reduction <add>, %25, %cst_21 [1] : vector<8x128xf32> to vector<8xf32>
    %27 = vector.shape_cast %26 : vector<8xf32> to vector<8x1xf32>
    %cst_22 = arith.constant 1.000000e-24 : f32
    %28 = vector.broadcast %cst_22 : f32 to vector<8x1xf32>
    %29 = arith.maximumf %27, %28 : vector<8x1xf32>
    %30 = math.rsqrt %29 : vector<8x1xf32>
    %31 = vector.broadcast %30 : vector<8x1xf32> to vector<8x128xf32>
    %32 = arith.mulf %24, %31 : vector<8x128xf32>
    %33 = arith.mulf %10, %10 : vector<8x128xf32>
    %cst_23 = arith.constant dense<0.000000e+00> : vector<8xf32>
    %34 = vector.multi_reduction <add>, %33, %cst_23 [1] : vector<8x128xf32> to vector<8xf32>
    %35 = vector.shape_cast %34 : vector<8xf32> to vector<8x1xf32>
    %cst_24 = arith.constant 1.000000e-24 : f32
    %36 = vector.broadcast %cst_24 : f32 to vector<8x1xf32>
    %37 = arith.maximumf %35, %36 : vector<8x1xf32>
    %38 = math.rsqrt %37 : vector<8x1xf32>
    %39 = vector.broadcast %38 : vector<8x1xf32> to vector<8x128xf32>
    %40 = arith.mulf %10, %39 : vector<8x128xf32>
    %41 = tpu.concatenate %32, %40 in 0 : vector<8x128xf32>, vector<8x128xf32> -> vector<16x128xf32>
    %c0_25 = arith.constant 0 : index
    %c0_26 = arith.constant 0 : index
    %42 = vector.load %arg11[%c0_25, %c0_26] : memref<16x128xf32, #tpu.memory_space<vmem>>, vector<16x128xf32>
    tpu.vector_store %arg11[%c0_25, %c0_26], %41 {strides = array<i32>} : memref<16x128xf32, #tpu.memory_space<vmem>>, vector<16x128xf32>,
    %43 = arith.truncf %41 : vector<16x128xf32> to vector<16x128xbf16>
    %c0_27 = arith.constant 0 : index
    %c0_28 = arith.constant 0 : index
    %44 = vector.load %arg9[%c0_27, %c0_28] : memref<128x32xf32, #tpu.memory_space<vmem>>, vector<128x32xf32>
    %45 = arith.truncf %44 : vector<128x32xf32> to vector<128x32xbf16>
    %cst_29 = arith.constant dense<0.000000e+00> : vector<16x32xf32>
    %46 = tpu.matmul %43, %45, %cst_29 {dimension_numbers = #tpu.dot_dimension_numbers<[1], [0], [0], [1], [0, 0, 1, 1], [], []>} : vector<16x128xbf16>, vector<128x32xbf16>, vector<16x32xf32> -> vector<16x32xf32>
    %c0_30 = arith.constant 0 : index
    %c0_31 = arith.constant 0 : index
    %47 = vector.load %arg10[%c0_30, %c0_31] : memref<128x32xbf16, #tpu.memory_space<vmem>>, vector<128x32xbf16>
    %cst_32 = arith.constant dense<0.000000e+00> : vector<16x32xf32>
    %48 = tpu.matmul %43, %47, %cst_32 {dimension_numbers = #tpu.dot_dimension_numbers<[1], [0], [0], [1], [0, 0, 1, 1], [], []>} : vector<16x128xbf16>, vector<128x32xbf16>, vector<16x32xf32> -> vector<16x32xf32>
    %49 = vector.extract_strided_slice %46 {offsets = [0, 0], sizes = [8, 32], strides = [1, 1]} : vector<16x32xf32> to vector<8x32xf32>
    %cst_33 = arith.constant 14.2857141 : f32
    %50 = vector.broadcast %cst_33 : f32 to vector<8x32xf32>
    %51 = arith.mulf %49, %50 : vector<8x32xf32>
    %52 = vector.extract_strided_slice %48 {offsets = [0, 0], sizes = [8, 32], strides = [1, 1]} : vector<16x32xf32> to vector<8x32xf32>
    %cst_34 = arith.constant 14.2857141 : f32
    %53 = vector.broadcast %cst_34 : f32 to vector<8x32xf32>
    %54 = arith.mulf %52, %53 : vector<8x32xf32>
    %55 = arith.mulf %32, %40 : vector<8x128xf32>
    %cst_35 = arith.constant dense<0.000000e+00> : vector<8xf32>
    %56 = vector.multi_reduction <add>, %55, %cst_35 [1] : vector<8x128xf32> to vector<8xf32>
    %57 = vector.shape_cast %56 : vector<8xf32> to vector<8x1xf32>
    %cst_36 = arith.constant 14.2857141 : f32
    %58 = vector.broadcast %cst_36 : f32 to vector<8x1xf32>
    %59 = arith.mulf %57, %58 : vector<8x1xf32>
    %60 = vector.extract_strided_slice %46 {offsets = [8, 0], sizes = [8, 32], strides = [1, 1]} : vector<16x32xf32> to vector<8x32xf32>
    %cst_37 = arith.constant 1.000000e+04 : f32
    %61 = vector.broadcast %cst_37 : f32 to vector<8x32xf32>
    %62 = arith.mulf %60, %61 : vector<8x32xf32>
    %63 = vector.extract_strided_slice %48 {offsets = [8, 0], sizes = [8, 32], strides = [1, 1]} : vector<16x32xf32> to vector<8x32xf32>
    %cst_38 = arith.constant 1.000000e+04 : f32
    %64 = vector.broadcast %cst_38 : f32 to vector<8x32xf32>
    %65 = arith.mulf %63, %64 : vector<8x32xf32>
    %cst_39 = arith.constant dense<0xFF800000> : vector<8xf32>
    %66 = vector.multi_reduction <maximumf>, %62, %cst_39 [1] : vector<8x32xf32> to vector<8xf32>
    %67 = vector.shape_cast %66 : vector<8xf32> to vector<8x1xf32>
    %cst_40 = arith.constant 1.000000e+04 : f32
    %68 = vector.broadcast %cst_40 : f32 to vector<8x1xf32>
    %69 = arith.maximumf %68, %67 : vector<8x1xf32>
    %70 = vector.broadcast %69 : vector<8x1xf32> to vector<8x32xf32>
    %71 = arith.subf %62, %70 : vector<8x32xf32>
    %72 = math.exp %71 : vector<8x32xf32>
    %cst_41 = arith.constant 1.000000e+04 : f32
    %73 = vector.broadcast %cst_41 : f32 to vector<8x1xf32>
    %74 = arith.subf %73, %69 : vector<8x1xf32>
    %75 = math.exp %74 : vector<8x1xf32>
    %cst_42 = arith.constant dense<0.000000e+00> : vector<8xf32>
    %76 = vector.multi_reduction <add>, %72, %cst_42 [1] : vector<8x32xf32> to vector<8xf32>
    %77 = vector.shape_cast %76 : vector<8xf32> to vector<8x1xf32>
    %78 = arith.addf %75, %77 : vector<8x1xf32>
    %cst_43 = arith.constant 1.000000e+00 : f32
    %79 = vector.broadcast %cst_43 : f32 to vector<8x1xf32>
    %80 = arith.divf %79, %78 : vector<8x1xf32>
    %81 = vector.broadcast %80 : vector<8x1xf32> to vector<8x32xf32>
    %82 = arith.mulf %72, %81 : vector<8x32xf32>
    %83 = arith.mulf %75, %80 : vector<8x1xf32>
    %cst_44 = arith.constant dense<0xFF800000> : vector<8xf32>
    %84 = vector.multi_reduction <maximumf>, %65, %cst_44 [1] : vector<8x32xf32> to vector<8xf32>
    %85 = vector.shape_cast %84 : vector<8xf32> to vector<8x1xf32>
    %86 = vector.broadcast %85 : vector<8x1xf32> to vector<8x32xf32>
    %87 = arith.subf %65, %86 : vector<8x32xf32>
    %88 = math.exp %87 : vector<8x32xf32>
    %cst_45 = arith.constant dense<0.000000e+00> : vector<8xf32>
    %89 = vector.multi_reduction <add>, %88, %cst_45 [1] : vector<8x32xf32> to vector<8xf32>
    %90 = vector.shape_cast %89 : vector<8xf32> to vector<8x1xf32>
    %cst_46 = arith.constant 1.000000e+00 : f32
    %91 = vector.broadcast %cst_46 : f32 to vector<8x1xf32>
    %92 = arith.divf %91, %90 : vector<8x1xf32>
    %93 = vector.broadcast %92 : vector<8x1xf32> to vector<8x32xf32>
    %94 = arith.mulf %88, %93 : vector<8x32xf32>
    %95 = tpu.iota {dimensions = array<i32: 1>} : vector<8x64xi32>
    %c0_i32 = arith.constant 0 : i32
    %96 = vector.broadcast %c0_i32 : i32 to vector<8x64xi32>
    %97 = arith.cmpi eq, %95, %96 : vector<8x64xi32>
    %cst_47 = arith.constant 0.000000e+00 : f32
    %98 = vector.shape_cast %59 : vector<8x1xf32> to vector<8x1xf32>
    %99 = vector.broadcast %98 : vector<8x1xf32> to vector<8x64xf32>
    %100 = vector.broadcast %cst_47 : f32 to vector<8x64xf32>
    %101 = arith.select %97, %99, %100 : vector<8x64xi1>, vector<8x64xf32>
    %c0_i32_48 = arith.constant 0 : i32
    %102 = vector.broadcast %c0_i32_48 : i32 to vector<8x64xi32>
    %103 = arith.cmpi eq, %95, %102 : vector<8x64xi32>
    %cst_49 = arith.constant 0.000000e+00 : f32
    %104 = vector.shape_cast %83 : vector<8x1xf32> to vector<8x1xf32>
    %105 = vector.broadcast %104 : vector<8x1xf32> to vector<8x64xf32>
    %106 = vector.broadcast %cst_49 : f32 to vector<8x64xf32>
    %107 = arith.select %103, %105, %106 : vector<8x64xi1>, vector<8x64xf32>
    %108 = tpu.concatenate %51, %54, %101 in 1 : vector<8x32xf32>, vector<8x32xf32>, vector<8x64xf32> -> vector<8x128xf32>
    %109 = tpu.concatenate %82, %94, %107 in 1 : vector<8x32xf32>, vector<8x32xf32>, vector<8x64xf32> -> vector<8x128xf32>
    %110 = tpu.concatenate %108, %109 in 0 : vector<8x128xf32>, vector<8x128xf32> -> vector<16x128xf32>
    %c0_50 = arith.constant 0 : index
    %c0_51 = arith.constant 0 : index
    %111 = vector.load %arg12[%c0_50, %c0_51] : memref<16x128xf32, #tpu.memory_space<vmem>>, vector<16x128xf32>
    tpu.vector_store %arg12[%c0_50, %c0_51], %110 {strides = array<i32>} : memref<16x128xf32, #tpu.memory_space<vmem>>, vector<16x128xf32>,
    return
  }
}

</mosaic_0001>

<bundles_post_ra>
// kernel: clip_distiller_forward.1
= control target key start
LH: loop header
LB: loop body
LE: loop exit
PB: predicated region body
PF: predicated region fallthrough
CT: control target
= control target key end

     0   :  { %vm54_vm0 = vcmask 1043456   ;;  %vm50_vm1 = vcmask 31744   ;;  %v802_v0 = vmov 0.0   ;;  %vm803_vm2 = vmmov 0   ;;  %s1052_s1 = inlined_call_operand.vmem [shape: f32[4,64], index: 1, kind: input, shape index: {}]   ;;  %s1053_s0 = inlined_call_operand.vmem [shape: f32[8,4], index: 0, kind: input, shape index: {}]   ;;  %s1054_s5 = inlined_call_operand.vmem [shape: bf16[64,64], index: 5, kind: input, shape index: {}]   ;;  %s1055_s3 = inlined_call_operand.vmem [shape: f32[4,128], index: 3, kind: input, shape index: {}]   ;;  %s1056_s7 = inlined_call_operand.vmem [shape: bf16[64,128], index: 7, kind: input, shape index: {}]   ;;  %s1057_s2 = inlined_call_operand.vmem [shape: f32[1,64], index: 2, kind: input, shape index: {}]   ;;  %s1058_s6 = inlined_call_operand.vmem [shape: f32[1,64], index: 6, kind: input, shape index: {}]   ;;  %s1059_s9 = inlined_call_operand.vmem [shape: f32[128,32], index: 9, kind: input, shape index: {}]   ;;  %s1060_s10 = inlined_call_operand.vmem [shape: bf16[128,32], index: 10, kind: input, shape index: {}]   ;;  %s1061_s8 = inlined_call_operand.vmem [shape: f32[1,128], index: 8, kind: input, shape index: {}]   ;;  %s1062_s4 = inlined_call_operand.vmem [shape: f32[1,128], index: 4, kind: input, shape index: {}]   ;;  %s1063_s11 = inlined_call_operand.vmem [shape: f32[16,128], index: 11, kind: output, shape index: {0}]   ;;  %s1064_s12 = inlined_call_operand.vmem [shape: f32[16,128], index: 12, kind: output, shape index: {1}]  }
   0x1   :  { %694 = vmatprep.subr.mxu0 %v802_v0  ;;  %v42_v1 = vld [vmem:[%s1052_s1] sm:$0xf]  ;;  %696 = vmatprep.mubr.msk.f32.mxu0 %vm803_vm2, %v802_v0  ;;  %v773_v4 = vld [vmem:[%s1054_s5 + $0x8] sm:$0xff]   ;;  %v774_v5 = vld [vmem:[%s1054_s5 + $0x10] sm:$0xff]   ;;  %vm249_vm3 = vcmask 523264   ;;  %vm570_vm4 = vcmask 261120  }
   0x2   :  { %v41_v2 = vld [vmem:[%s1053_s0] sm:$0xff]  ;;  %695 = vmatpush3.msk.msra.mxu0 %vm54_vm0, %v42_v1  ;;  %699 = vmatprep.subr.mxu1 %v802_v0  ;;  %v775_v6 = vld [vmem:[%s1054_s5 + $0x18] sm:$0xff]   ;;  %v777_v9 = vld [vmem:[%s1056_s7 + $0x8] sm:$0xff]  }
   0x3   :  { %v772_v3 = vld [vmem:[%s1054_s5] sm:$0xff]   ;;  %697 = vmatmul.mubr.msk.f32.vlgmr.msra.gmra.mrb[0].mxu0 %vm50_vm1, %v41_v2  ;;  %704 = vmatprep.subr.bf16.mxu0 %v802_v0  ;;  %v778_v15 = vld [vmem:[%s1056_s7 + $0x10] sm:$0xff]   ;;  %v779_v16 = vld [vmem:[%s1056_s7 + $0x18] sm:$0xff]  }
   0x4   :  { %705 = vmatpush3.bf16.msra.mxu0 %v772_v3  ;;  %712 = vmatprep.mubr.msk.bf16.mxu0 %vm803_vm2, %v802_v0  ;;  %v128_v7 = vld [vmem:[%s1055_s3] sm:$0xf]  ;;  %v393_v28 = vld [vmem:[%s1059_s9 + $0x8] sm:$0xff]  ;;  %v394_v31 = vld [vmem:[%s1059_s9 + $0x10] sm:$0xff] }
   0x5   :  { %706 = vmatprep.subr.bf16.mxu0 %v802_v0  ;;  %701 = vmatprep.mubr.msk.f32.mxu1 %vm803_vm2, %v802_v0  ;;  %v776_v8 = vld [vmem:[%s1056_s7] sm:$0xff]   ;;  %v395_v32 = vld [vmem:[%s1059_s9 + $0x18] sm:$0xff]  ;;  %v781_v34 = vld [vmem:[%s1060_s10 + $0x8] sm:$0xff]   ;;  %s805_s7 = smov 64  }
   0x6   :  { %700 = vmatpush3.msk.msra.mxu1 %vm54_vm0, %v128_v7  ;;  %v636_v10 = vld [vmem:[%s1057_s2] ss:$0 sm:$0xff]  ;;  %v409_v33 = vpack.c.bf16 %v395_v32, %v394_v31  ;;  %v397_v36 = vld [vmem:[%s1059_s9 + $0x28] sm:$0xff]  ;;  %v782_v37 = vld [vmem:[%s1060_s10 + $0x10] sm:$0xff]  }
   0x7   :  { %702 = vmatmul.mubr.msk.f32.vlgmr.msra.gmra.mrb[0].mxu1 %vm50_vm1, %v41_v2  ;;  %716 = vmatprep.subr.bf16.mxu1 %v802_v0  ;;  %v642_v19 = vld [vmem:[%s1058_s6] ss:$0 sm:$0xff]  ;;  %v398_v49 = vld [vmem:[%s1059_s9 + $0x30] sm:$0xff]  ;;  %v399_v50 = vld [vmem:[%s1059_s9 + $0x38] sm:$0xff] }
   0x8   :  { %707 = vmatpush3.bf16.msra.mxu0 %v773_v4  ;;  %717 = vmatpush3.bf16.msra.mxu1 %v776_v8  ;;  %v392_v27 = vld [vmem:[%s1059_s9] sm:$0xff]  ;;  %v411_v51 = vpack.c.bf16 %v399_v50, %v398_v49  ;;  %v783_v52 = vld [vmem:[%s1060_s10 + $0x18] sm:$0xff]   ;;  %v401_v54 = vld [vmem:[%s1059_s9 + $0x48] sm:$0xff] }
   0x9   :  { %708 = vmatprep.subr.bf16.mxu0 %v802_v0  ;;  %724 = vmatprep.mubr.msk.bf16.mxu1 %vm803_vm2, %v802_v0  ;;  %v408_v29 = vpack.c.bf16 %v393_v28, %v392_v27  ;;  %v780_v30 = vld [vmem:[%s1060_s10] sm:$0xff]   ;;  %v402_v57 = vld [vmem:[%s1059_s9 + $0x50] sm:$0xff]  ;;  %v403_v58 = vld [vmem:[%s1059_s9 + $0x58] sm:$0xff] }
   0xa   :  { %718 = vmatprep.subr.bf16.mxu1 %v802_v0  ;;  %v396_v35 = vld [vmem:[%s1059_s9 + $0x20] sm:$0xff]  ;;  %v785_v59 = vld [vmem:[%s1060_s10 + $0x28] sm:$0xff]   ;;  %v413_v60 = vpack.c.bf16 %v403_v58, %v402_v57  ;;  %v786_v1 = vld [vmem:[%s1060_s10 + $0x30] sm:$0xff]  }
   0xb   :  { %v410_v38 = vpack.c.bf16 %v397_v36, %v396_v35  ;;  %v648_v39 = vld [vmem:[%s1061_s8] ss:$0 sm:$0xff]  ;;  %v405_v62 = vld [vmem:[%s1059_s9 + $0x68] sm:$0xff]  ;;  %v406_v2 = vld [vmem:[%s1059_s9 + $0x70] sm:$0xff] }
   0xc   :  { %709 = vmatpush3.bf16.msra.mxu0 %v774_v5  ;;  %719 = vmatpush3.bf16.msra.mxu1 %v777_v9  ;;  %v639_v40 = vld [vmem:[%s1062_s4] ss:$0 sm:$0xff]  ;;  %v407_v3 = vld [vmem:[%s1059_s9 + $0x78] sm:$0xff] }
   0xd   :  { %710 = vmatprep.subr.bf16.mxu0 %v802_v0  ;;  %720 = vmatprep.subr.bf16.mxu1 %v802_v0  ;;  %v400_v53 = vld [vmem:[%s1059_s9 + $0x40] sm:$0xff]  ;;  %v415_v4 = vpack.c.bf16 %v407_v3, %v406_v2  ;;  %v787_v5 = vld [vmem:[%s1060_s10 + $0x38] sm:$0xff]  }
   0xe   :  { %v412_v55 = vpack.c.bf16 %v401_v54, %v400_v53  ;;  %v784_v56 = vld [vmem:[%s1060_s10 + $0x20] sm:$0xff]  }
   0xf   :  { %v404_v61 = vld [vmem:[%s1059_s9 + $0x60] sm:$0xff] }
  0x10   :  { %711 = vmatpush3.bf16.msra.mxu0 %v775_v6  ;;  %721 = vmatpush3.bf16.msra.mxu1 %v778_v15  ;;  %v414_v63 = vpack.c.bf16 %v405_v62, %v404_v61 }
  0x11   :  { %728 = vmatprep.subr.bf16.mxu0 %v802_v0  ;;  %722 = vmatprep.subr.bf16.mxu1 %v802_v0 }
  0x14   :  { %723 = vmatpush3.bf16.msra.mxu1 %v779_v16 }
  0x15   :  { %748 = vmatprep.subr.bf16.mxu1 %v802_v0 }
  0xd6   :  { %v124_v11 = vpop.f32.mrb[0].mxu0 }
  0xd7   :  { %v125_v12 = vadd.f32 %v636_v10, %v124_v11  ;;  %v698_v13 = vpop.f32.mrb[1].mxu0 }
  0xd9   :  { %v209_v14 = vpack.c.bf16 %v125_v12, %v125_v12 }
  0xda   :  { %v205_v17 = vpop.f32.mrb[0].mxu1 }
  0xdb   :  { %713 = vmatmul.mubr.msk.bf16.vlgmr.msra.gmra.mrb[4].mxu0 %vm249_vm3, %v209_v14  ;;  %v703_v18 = vpop.f32.mrb[1].mxu1  ;;  %v206_v45 = vadd.f32 %v639_v40, %v205_v17 }
  0xdc   :  { %744 = vmatprep.mubr.msk.bf16.mxu0 %vm803_vm2, %v802_v0  ;;  %729 = vmatpush3.bf16.msra.mxu0 %v408_v29 }
  0xdd   :  { %730 = vmatprep.subr.bf16.mxu0 %v802_v0  ;;  %v383_v48 = vmul.f32 %v206_v45, %v206_v45 }
  0xe0   :  { %731 = vmatpush3.bf16.msra.mxu0 %v409_v33 }
  0xe1   :  { %732 = vmatprep.subr.bf16.mxu0 %v802_v0 }
  0xe4   :  { %733 = vmatpush3.bf16.msra.mxu0 %v410_v38 }
  0xe5   :  { %734 = vmatprep.subr.bf16.mxu0 %v802_v0 }
  0xe8   :  { %735 = vmatpush3.bf16.msra.mxu0 %v411_v51 }
  0xe9   :  { %736 = vmatprep.subr.bf16.mxu0 %v802_v0 }
  0xec   :  { %737 = vmatpush3.bf16.msra.mxu0 %v412_v55 }
  0xed   :  { %738 = vmatprep.subr.bf16.mxu0 %v802_v0 }
  0xf0   :  { %739 = vmatpush3.bf16.msra.mxu0 %v413_v60 }
  0xf1   :  { %740 = vmatprep.subr.bf16.mxu0 %v802_v0 }
  0xf4   :  { %741 = vmatpush3.bf16.msra.mxu0 %v414_v63 }
  0xf5   :  { %742 = vmatprep.subr.bf16.mxu0 %v802_v0 }
  0xf8   :  { %743 = vmatpush3.bf16.msra.mxu0 %v415_v4 }
 0x1ae   :  { %v287_v20 = vpop.f32.mrb[4].mxu0 }
 0x1af   :  { %v288_v21 = vadd.f32 %v642_v19, %v287_v20  ;;  %v714_v22 = vpop.f32.mrb[5].mxu0 }
 0x1b0   :  { %v290_v23 = vpop.f32.mrb[6].mxu0 }
 0x1b1   :  { %v293_v24 = vmax.f32 %v288_v21, 0.0  ;;  %v715_v25 = vpop.f32.mrb[7].mxu0 }
 0x1b3   :  { %v294_v26 = vpack.c.bf16 %v293_v24, %v293_v24 }
 0x1b5   :  { %725 = vmatmul.mubr.msk.bf16.vlgmr.msra.gmra.mrb[4].mxu1 %vm249_vm3, %v294_v26 }
 0x1b6   :  { %764 = vmatprep.mubr.msk.bf16.mxu1 %vm803_vm2, %v802_v0  ;;  %749 = vmatpush3.bf16.msra.mxu1 %v780_v30 }
 0x1b7   :  { %750 = vmatprep.subr.bf16.mxu1 %v802_v0 }
 0x1ba   :  { %751 = vmatpush3.bf16.msra.mxu1 %v781_v34 }
 0x1bb   :  { %752 = vmatprep.subr.bf16.mxu1 %v802_v0 }
 0x1be   :  { %753 = vmatpush3.bf16.msra.mxu1 %v782_v37 }
 0x1bf   :  { %754 = vmatprep.subr.bf16.mxu1 %v802_v0 }
 0x1c2   :  { %755 = vmatpush3.bf16.msra.mxu1 %v783_v52 }
 0x1c3   :  { %756 = vmatprep.subr.bf16.mxu1 %v802_v0 }
 0x1c6   :  { %757 = vmatpush3.bf16.msra.mxu1 %v784_v56 }
 0x1c7   :  { %758 = vmatprep.subr.bf16.mxu1 %v802_v0 }
 0x1ca   :  { %759 = vmatpush3.bf16.msra.mxu1 %v785_v59 }
 0x1cb   :  { %760 = vmatprep.subr.bf16.mxu1 %v802_v0 }
 0x1ce   :  { %761 = vmatpush3.bf16.msra.mxu1 %v786_v1 }
 0x1cf   :  { %762 = vmatprep.subr.bf16.mxu1 %v802_v0 }
 0x1d2   :  { %763 = vmatpush3.bf16.msra.mxu1 %v787_v5 }
 0x288   :  { %v371_v41 = vpop.f32.mrb[4].mxu1 }
 0x289   :  { %v372_v42 = vadd.f32 %v648_v39, %v371_v41  ;;  %v726_v43 = vpop.f32.mrb[5].mxu1  ;;  %v601_v41 = vlaneseq }
 0x28a   :  { %v374_v44 = vpop.f32.mrb[6].mxu1 }
 0x28b   :  { %v727_v46 = vpop.f32.mrb[7].mxu1  ;;  %v377_v47 = vmul.f32 %v372_v42, %v372_v42  ;;  %v602_v44 = vand.u32 127, %v601_v41 }
 0x28d   :  { %378 = vadd.xlane.f32.xlu0 %v377_v47  ;;  %vm603_vm5 = vcmp.eq.s32.totalorder %v602_v44, 0 }
 0x291   :  { %384 = vadd.xlane.f32.xlu0 %v383_v48 }
 0x31a   :  { %v379_v6 = vpop.xlane.xlu0 %378 }
 0x31b   :  { %v380_v7 = vmax.f32 %v379_v6, 1e-24 }
 0x31d   :  { %788 = vrsqrt.f32 %v380_v7 }
 0x31e   :  { %v385_v8 = vpop.xlane.xlu0 %384 }
 0x31f   :  { %v386_v9 = vmax.f32 %v385_v8, 1e-24 }
 0x321   :  { %790 = vrsqrt.f32 %v386_v9 }
 0x327   :  { %v789_v10 = vpop.eup %788 }
 0x328   :  { %v382_v11 = vmul.f32 %v789_v10, %v372_v42 }
 0x32a   :  { %389 = vst [vmem:[%s1063_s11] sm:$0xff] %v382_v11 }
 0x32b   :  { %v791_v12 = vpop.eup %790 }
 0x32c   :  { %v388_v13 = vmul.f32 %v791_v12, %v206_v45 }
 0x32e   :  { %390 = vst [vmem:[%s1063_s11 + $0x8] sm:$0xff] %v388_v13  ;;  %v391_v0 = vpack.c.bf16 %v388_v13, %v382_v11  ;;  %v564_v14 = vmul.f32 %v388_v13, %v382_v11  ;;  %s804_s11 = smov 32  }
 0x330   :  { %745 = vmatmul.mubr.bf16.vlgmr.msra.gmra.mrb[8].mxu0 %v391_v0  ;;  %765 = vmatmul.mubr.bf16.vlgmr.msra.gmra.mrb[8].mxu1 %v391_v0 }
 0x403   :  { %v450_v15 = vpop.f32.mrb[8].mxu0  ;;  %v555_v16 = vpop.f32.mrb[8].mxu1 }
 0x404   :  { %v746_v17 = vpop.f32.mrb[9].mxu0  ;;  %v766_v18 = vpop.f32.mrb[9].mxu1  ;;  %v563_v38 = vmul.f32 14.285714, %v555_v16  ;;  %v562_v56 = vmul.f32 14.285714, %v450_v15 }
 0x405   :  { %v453_v19 = vpop.f32.mrb[10].mxu0  ;;  %v558_v20 = vpop.f32.mrb[10].mxu1 }
 0x406   :  { %v568_v21 = vmul.f32 10000.0, %v453_v19  ;;  %v747_v22 = vpop.f32.mrb[11].mxu0  ;;  %v767_v23 = vpop.f32.mrb[11].mxu1  ;;  %v569_v24 = vmul.f32 10000.0, %v558_v20 }
 0x408   :  { %v571_v25 = vsel %vm570_vm4, %v568_v21, -inf  ;;  %v589_v26 = vsel %vm570_vm4, %v569_v24, -inf }
 0x409   :  { %572 = vmax.xlane.f32.xlu1 %v571_v25 }
 0x40d   :  { %590 = vmax.xlane.f32.xlu1 %v589_v26 }
 0x496   :  { %v573_v27 = vpop.xlane.xlu1 %572 }
 0x497   :  { %v574_v28 = vmax.f32 %v573_v27, 10000.0 }
 0x499   :  { %v575_v29 = vsub.f32 %v568_v21, %v574_v28  ;;  %v578_v39 = vsub.f32 10000.0, %v574_v28 }
 0x49a   :  { %v591_v30 = vpop.xlane.xlu1 %590 }
 0x49b   :  { %v576_v31 = vmul.f32 1.442695, %v575_v29  ;;  %v592_v32 = vsub.f32 %v569_v24, %v591_v30  ;;  %v579_v40 = vmul.f32 1.442695, %v578_v39 }
 0x49d   :  { %792 = vpow2.f32 %v576_v31  ;;  %v593_v33 = vmul.f32 1.442695, %v592_v32 }
 0x49f   :  { %794 = vpow2.f32 %v593_v33 }
 0x4a0   :  { %796 = vpow2.f32 %v579_v40 }
 0x4a7   :  { %v793_v34 = vpop.eup %792 }
 0x4a8   :  { %v581_v35 = vsel %vm570_vm4, %v793_v34, 0.0 }
 0x4a9   :  { %v795_v36 = vpop.eup %794  ;;  %582 = vadd.xlane.f32.xlu0 %v581_v35 }
 0x4aa   :  { %v595_v37 = vsel %vm570_vm4, %v795_v36, 0.0  ;;  %v797_v42 = vpop.eup %796 }
 0x4ab   :  { %596 = vadd.xlane.f32.xlu1 %v595_v37 }
 0x4ad   :  { %565 = vadd.xlane.f32.xlu0 %v564_v14 }
 0x4bc   :  { %607 = vrot.lane.b32.xlu1 %v563_v38, %s804_s11 }
 0x536   :  { %v583_v43 = vpop.xlane.xlu0 %582 }
 0x537   :  { %v584_v45 = vadd.f32 %v797_v42, %v583_v43 }
 0x538   :  { %v597_v46 = vpop.xlane.xlu1 %596 }
 0x539   :  { %798 = vrcp.f32 %v584_v45 }
 0x53a   :  { %800 = vrcp.f32 %v597_v46  ;;  %v566_v47 = vpop.xlane.xlu0 %565 }
 0x53b   :  { %v567_v48 = vmul.f32 14.285714, %v566_v47 }
 0x53c   :  { %v608_v55 = vpop.permute.xlu1 %607 }
 0x53d   :  { %v604_v49 = vsel %vm603_vm5, %v567_v48, 0.0  ;;  %v614_v57 = vsel %vm570_vm4, %v562_v56, %v608_v55 }
 0x53e   :  { %611 = vrot.lane.b32.xlu1 %v604_v49, %s805_s7 }
 0x543   :  { %v799_v50 = vpop.eup %798 }
 0x544   :  { %v801_v51 = vpop.eup %800  ;;  %v588_v52 = vmul.f32 %v799_v50, %v797_v42  ;;  %v587_v60 = vmul.f32 %v799_v50, %v793_v34 }
 0x545   :  { %v600_v53 = vmul.f32 %v801_v51, %v795_v36 }
 0x546   :  { %v605_v54 = vsel %vm603_vm5, %v588_v52, 0.0 }
 0x547   :  { %617 = vrot.lane.b32.xlu0 %v600_v53, %s804_s11  ;;  %621 = vrot.lane.b32.xlu1 %v605_v54, %s805_s7 }
 0x5b0   :  { %v612_v58 = vpop.permute.xlu1 %611 }
 0x5b1   :  { %v615_v59 = vsel %vm249_vm3, %v614_v57, %v612_v58 }
 0x5b2   :  { %626 = vst [vmem:[%s1064_s12] sm:$0xff] %v615_v59 }
 0x5b9   :  { %v618_v61 = vpop.permute.xlu0 %617  ;;  %v622_v62 = vpop.permute.xlu1 %621 }
 0x5ba   :  { %v624_v63 = vsel %vm570_vm4, %v587_v60, %v618_v61 }
 0x5bb   :  { %v625_v1 = vsel %vm249_vm3, %v624_v63, %v622_v62 }
 0x5bc   :  { %627 = vst [vmem:[%s1064_s12 + $0x8] sm:$0xff] %v625_v1 }

</bundles_post_ra>
